<compile_context>
chip_gen: v5e
topology: v5e:2x2
jax: 0.10.0
libtpu: 0.0.40
codegen_flags: <defaults>
</compile_context>

<pallas_src>
import functools

import jax
import jax.numpy as jnp
from jax.experimental import pallas as pl
from jax.experimental.pallas import tpu as pltpu

BN_EPS = 1e-5
LANE = 128
SUBLANE = 8


def _round_up(x, m):
    return ((x + m - 1) // m) * m


# --------------------------------------------------------------------------------------
# Pass 1: per row-stripe  z = (D^-1 A + I) @ x @ W^T + b   and partial BN statistics
# --------------------------------------------------------------------------------------
def _agg_linear_kernel(a_ref, x_ref, wt_ref, b_ref, z_ref, stat_ref, *, tm, n_valid):
    # 1) SimpleConv(aggr='mean', combine_root='sum'):  h = (D^-1 A + I) @ x   (bf16 -> f32 acc)
    h = jnp.dot(a_ref[...], x_ref[...], preferred_element_type=jnp.float32)

    # 2) Linear: z = h @ W^T + b
    z = jnp.dot(h.astype(wt_ref.dtype), wt_ref[...],
                preferred_element_type=jnp.float32) + b_ref[...]
    z_ref[...] = z

    # 3) partial BatchNorm statistics over the valid (non-padded) rows of this stripe
    fo = z.shape[1]
    row = pl.program_id(0) * tm + jax.lax.broadcasted_iota(jnp.int32, (tm, 1), 0)
    valid = (row < n_valid).astype(jnp.float32)
    zm = z * valid
    s1 = jnp.sum(zm, axis=0, keepdims=True)          # (1, fo)  sum
    s2 = jnp.sum(zm * zm, axis=0, keepdims=True)     # (1, fo)  sum of squares

    ridx = jax.lax.broadcasted_iota(jnp.int32, (SUBLANE, fo), 0)
    s1b = jnp.broadcast_to(s1, (SUBLANE, fo))
    s2b = jnp.broadcast_to(s2, (SUBLANE, fo))
    stats8 = jnp.where(ridx == 0, s1b, jnp.where(ridx == 1, s2b, 0.0))
    stat_ref[...] = stats8[None]                     # (1, 8, fo): row0=sum, row1=sumsq


# --------------------------------------------------------------------------------------
# Pass 2: BN apply + AsymSwiGLU gate  (out = sigmoid(zn @ C) * zn)
# --------------------------------------------------------------------------------------
def _bn_gate_kernel(z_ref, stat_ref, gamma_ref, beta_ref, c_ref, o_ref, *, n_valid):
    z = z_ref[...]
    inv_n = 1.0 / n_valid
    mean = stat_ref[0:1, :] * inv_n
    var = jnp.maximum(stat_ref[1:2, :] * inv_n - mean * mean, 0.0)
    inv_std = jax.lax.rsqrt(var + BN_EPS)
    zn = (z - mean) * inv_std * gamma_ref[...] + beta_ref[...]

    gate = jax.nn.sigmoid(
        jnp.dot(zn.astype(c_ref.dtype), c_ref[...],
                preferred_element_type=jnp.float32))
    o_ref[...] = (gate * zn).astype(o_ref.dtype)


# --------------------------------------------------------------------------------------
# Wrapper
# --------------------------------------------------------------------------------------
def asymconv_forward(x, edge_index, w, b, gamma, beta, C, *, tm=256,
                     compute_dtype=jnp.bfloat16):
    """x: [N, in_dim] f32, edge_index: [2, E] int32 (row 0 = src, row 1 = dst)."""
    N, in_dim = x.shape
    out_dim = w.shape[0]

    # --- glue: dense normalized adjacency with self-root add  A_hat = D^-1 A + I ---
    src, dst = edge_index[0], edge_index[1]
    ones = jnp.ones((edge_index.shape[1],), jnp.float32)
    deg = jnp.zeros((N,), jnp.float32).at[dst].add(ones)
    A = jnp.zeros((N, N), jnp.float32).at[dst, src].add(ones)
    A_hat = A / jnp.maximum(deg, 1.0)[:, None] + jnp.eye(N, dtype=jnp.float32)

    # --- padding: node axis to a multiple of the row tile, feature axes to lane width ---
    tm = max(SUBLANE, min(tm, _round_up(N, SUBLANE)))
    n_pad = _round_up(N, tm)
    fi_pad = _round_up(in_dim, LANE)
    fo_pad = _round_up(out_dim, LANE)
    num_tiles = n_pad // tm

    a_p = jnp.pad(A_hat, ((0, n_pad - N), (0, n_pad - N))).astype(compute_dtype)
    x_p = jnp.pad(x, ((0, n_pad - N), (0, fi_pad - in_dim))).astype(compute_dtype)
    wt_p = jnp.pad(w.T, ((0, fi_pad - in_dim), (0, fo_pad - out_dim))).astype(compute_dtype)
    b_p = jnp.pad(b, (0, fo_pad - out_dim)).reshape(1, fo_pad).astype(jnp.float32)
    g_p = jnp.pad(gamma, (0, fo_pad - out_dim)).reshape(1, fo_pad).astype(jnp.float32)
    be_p = jnp.pad(beta, (0, fo_pad - out_dim)).reshape(1, fo_pad).astype(jnp.float32)
    c_p = jnp.pad(C, ((0, fo_pad - out_dim), (0, fo_pad - out_dim))).astype(compute_dtype)

    # 64 MiB scoped VMEM: enough headroom for TM=256 stripes at large N on v6e/v5e and at
    # the physical cap on v7x (drop tm or keep bf16 rather than raising it further there).
    cparams = pltpu.CompilerParams(dimension_semantics=("parallel",),
                                   vmem_limit_bytes=64 * 1024 * 1024)

    # ---------------- pass 1: aggregation + linear + partial BN stats ----------------
    flops1 = 2 * n_pad * n_pad * fi_pad + 2 * n_pad * fi_pad * fo_pad
    bytes1 = (n_pad * n_pad * 2 + num_tiles * n_pad * fi_pad * 2 + fi_pad * fo_pad * 2
              + fo_pad * 4 + n_pad * fo_pad * 4 + num_tiles * SUBLANE * fo_pad * 4)
    z_pad, stats_partial = pl.pallas_call(
        functools.partial(_agg_linear_kernel, tm=tm, n_valid=N),
        out_shape=(jax.ShapeDtypeStruct((n_pad, fo_pad), jnp.float32),
                   jax.ShapeDtypeStruct((num_tiles, SUBLANE, fo_pad), jnp.float32)),
        grid=(num_tiles,),
        in_specs=[
            pl.BlockSpec((tm, n_pad), lambda i: (i, 0)),         # A_hat row stripe (pipelined)
            pl.BlockSpec((n_pad, fi_pad), lambda i: (0, 0)),     # x (resident)
            pl.BlockSpec((fi_pad, fo_pad), lambda i: (0, 0)),    # W^T (resident)
            pl.BlockSpec((1, fo_pad), lambda i: (0, 0)),         # bias
        ],
        out_specs=(
            pl.BlockSpec((tm, fo_pad), lambda i: (i, 0)),            # z stripe
            pl.BlockSpec((1, SUBLANE, fo_pad), lambda i: (i, 0, 0)),  # per-tile BN partials
        ),
        compiler_params=cparams,
        cost_estimate=pl.CostEstimate(flops=flops1, transcendentals=0,
                                      bytes_accessed=bytes1),
    )(a_p, x_p, wt_p, b_p)

    # tiny glue reduction of per-tile partials: row0 = sum(z), row1 = sum(z^2)
    stats = stats_partial.sum(axis=0)  # (8, fo_pad)

    # ---------------- pass 2: BN apply + gate matmul + sigmoid + product ----------------
    flops2 = 2 * n_pad * fo_pad * fo_pad + 8 * n_pad * fo_pad
    bytes2 = (2 * n_pad * fo_pad * 4 + fo_pad * fo_pad * 2
              + SUBLANE * fo_pad * 4 + 2 * fo_pad * 4)
    out_pad = pl.pallas_call(
        functools.partial(_bn_gate_kernel, n_valid=N),
        out_shape=jax.ShapeDtypeStruct((n_pad, fo_pad), jnp.float32),
        grid=(num_tiles,),
        in_specs=[
            pl.BlockSpec((tm, fo_pad), lambda i: (i, 0)),        # z stripe (pipelined)
            pl.BlockSpec((SUBLANE, fo_pad), lambda i: (0, 0)),   # BN sums
            pl.BlockSpec((1, fo_pad), lambda i: (0, 0)),         # gamma
            pl.BlockSpec((1, fo_pad), lambda i: (0, 0)),         # beta
            pl.BlockSpec((fo_pad, fo_pad), lambda i: (0, 0)),    # C (gate matrix)
        ],
        out_specs=pl.BlockSpec((tm, fo_pad), lambda i: (i, 0)),
        compiler_params=cparams,
        cost_estimate=pl.CostEstimate(flops=flops2, transcendentals=n_pad * fo_pad,
                                      bytes_accessed=bytes2),
    )(z_pad, stats, g_p, be_p, c_p)

    return out_pad[:N, :out_dim]


# --------------------------------------------------------------------------------------
# References
# --------------------------------------------------------------------------------------
def asymconv_ref(x, edge_index, w, b, gamma, beta, C):
    """Exact f32 reference (scatter-mean aggregation)."""
    N = x.shape[0]
    src, dst = edge_index[0], edge_index[1]
    ones = jnp.ones((edge_index.shape[1],), jnp.float32)
    deg = jnp.zeros((N,), jnp.float32).at[dst].add(ones)
    agg = jnp.zeros_like(x).at[dst].add(x[src]) / jnp.maximum(deg, 1.0)[:, None]
    h = agg + x
    z = h @ w.T + b
    mean = jnp.mean(z, axis=0, keepdims=True)
    var = jnp.mean((z - mean) ** 2, axis=0, keepdims=True)
    zn = (z - mean) / jnp.sqrt(var + BN_EPS) * gamma + beta
    gate = jax.nn.sigmoid(zn @ C)
    return gate * zn


def asymconv_ref_matched(x, edge_index, w, b, gamma, beta, C, compute_dtype=jnp.bfloat16):
    """Pure-JAX reference using the same bf16-operand / f32-accumulation policy as the kernel."""
    N = x.shape[0]
    src, dst = edge_index[0], edge_index[1]
    ones = jnp.ones((edge_index.shape[1],), jnp.float32)
    deg = jnp.zeros((N,), jnp.float32).at[dst].add(ones)
    A = jnp.zeros((N, N), jnp.float32).at[dst, src].add(ones)
    A_hat = (A / jnp.maximum(deg, 1.0)[:, None] + jnp.eye(N)).astype(compute_dtype)
    h = jnp.dot(A_hat, x.astype(compute_dtype), preferred_element_type=jnp.float32)
    z = jnp.dot(h.astype(compute_dtype), w.T.astype(compute_dtype),
                preferred_element_type=jnp.float32) + b
    mean = jnp.mean(z, axis=0, keepdims=True)
    var = jnp.maximum(jnp.mean(z * z, axis=0, keepdims=True) - mean * mean, 0.0)
    zn = (z - mean) * jax.lax.rsqrt(var + BN_EPS) * gamma + beta
    gate = jax.nn.sigmoid(jnp.dot(zn.astype(compute_dtype), C.astype(compute_dtype),
                                  preferred_element_type=jnp.float32))
    return gate * zn


if __name__ == "__main__":
    key = jax.random.PRNGKey(0)
    N, E = 16, 32          # nodes, edges
    in_dim, out_dim = 8, 16

    k_x, k_e, k_w, k_b, k_c = jax.random.split(key, 5)
    x = jax.random.normal(k_x, (N, in_dim), jnp.float32)
    edge_index = jax.random.randint(k_e, (2, E), 0, N, dtype=jnp.int32)

    # Linear weight/bias, BN affine (PyTorch defaults), gate matrix C
    w = jax.random.normal(k_w, (out_dim, in_dim), jnp.float32) * (1.0 / jnp.sqrt(in_dim))
    b = jax.random.normal(k_b, (out_dim,), jnp.float32) * 0.1
    gamma = jnp.ones((out_dim,), jnp.float32)
    beta = jnp.zeros((out_dim,), jnp.float32)
    C = jax.random.normal(k_c, (out_dim, out_dim), jnp.float32) * (1.0 / jnp.sqrt(out_dim))

    out = asymconv_forward(x, edge_index, w, b, gamma, beta, C)
    out = jax.block_until_ready(out)

    # Tight check against a matched-precision (bf16 operands, f32 accumulation) reference:
    ref_m = asymconv_ref_matched(x, edge_index, w, b, gamma, beta, C)
    assert jnp.allclose(out, ref_m, rtol=1e-2, atol=1e-2), "mismatch vs matched-precision ref"

    # Semantics check against the exact f32 reference (loosened for bf16 matmul operands):
    ref = asymconv_ref(x, edge_index, w, b, gamma, beta, C)
    assert jnp.allclose(out, ref, rtol=5e-2, atol=5e-2), "mismatch vs exact f32 ref"

    print("KERNEL_OK")
</pallas_src>

<mosaic_0001>
module attributes {stable_mosaic.version = 11 : i64} {
  func.func @_agg_linear_kernel(%arg0: i32, %arg1: memref<16x16xbf16, #tpu.memory_space<vmem>>, %arg2: memref<16x128xbf16, #tpu.memory_space<vmem>>, %arg3: memref<128x128xbf16, #tpu.memory_space<vmem>>, %arg4: memref<1x128xf32, #tpu.memory_space<vmem>>, %arg5: memref<16x128xf32, #tpu.memory_space<vmem>>, %arg6: memref<1x8x128xf32, #tpu.memory_space<vmem>>) attributes {dimension_semantics = [#tpu.dimension_semantics<parallel>], iteration_bounds = array<i64: 1>, scalar_prefetch = 0 : i64, scratch_operands = 0 : i64, tpu.core_type = #tpu.core_type<tc>, window_params = [{transform_indices = @transform_0, window_bounds = array<i64: 16, 16>}, {pipeline_mode = #tpu.pipeline_mode<synchronous>, transform_indices = @transform_1, window_bounds = array<i64: 16, 128>}, {pipeline_mode = #tpu.pipeline_mode<synchronous>, transform_indices = @transform_2, window_bounds = array<i64: 128, 128>}, {pipeline_mode = #tpu.pipeline_mode<synchronous>, transform_indices = @transform_3, window_bounds = array<i64: 1, 128>}, {transform_indices = @transform_4, window_bounds = array<i64: 16, 128>}, {transform_indices = @transform_5, window_bounds = array<i64: 1, 8, 128>}]} {
    %c0 = arith.constant 0 : index
    %c0_0 = arith.constant 0 : index
    %0 = vector.load %arg1[%c0, %c0_0] : memref<16x16xbf16, #tpu.memory_space<vmem>>, vector<16x16xbf16>
    %c0_1 = arith.constant 0 : index
    %c0_2 = arith.constant 0 : index
    %1 = vector.load %arg2[%c0_1, %c0_2] : memref<16x128xbf16, #tpu.memory_space<vmem>>, vector<16x128xbf16>
    %cst = arith.constant dense<0.000000e+00> : vector<16x128xf32>
    %2 = tpu.matmul %0, %1, %cst {dimension_numbers = #tpu.dot_dimension_numbers<[1], [0], [0], [1], [0, 0, 1, 1], [], []>} : vector<16x16xbf16>, vector<16x128xbf16>, vector<16x128xf32> -> vector<16x128xf32>
    %3 = arith.truncf %2 : vector<16x128xf32> to vector<16x128xbf16>
    %c0_3 = arith.constant 0 : index
    %c0_4 = arith.constant 0 : index
    %4 = vector.load %arg3[%c0_3, %c0_4] : memref<128x128xbf16, #tpu.memory_space<vmem>>, vector<128x128xbf16>
    %cst_5 = arith.constant dense<0.000000e+00> : vector<16x128xf32>
    %5 = tpu.matmul %3, %4, %cst_5 {dimension_numbers = #tpu.dot_dimension_numbers<[1], [0], [0], [1], [0, 0, 1, 1], [], []>} : vector<16x128xbf16>, vector<128x128xbf16>, vector<16x128xf32> -> vector<16x128xf32>
    %c0_6 = arith.constant 0 : index
    %c0_7 = arith.constant 0 : index
    %6 = vector.load %arg4[%c0_6, %c0_7] : memref<1x128xf32, #tpu.memory_space<vmem>>, vector<1x128xf32>
    %7 = vector.broadcast %6 : vector<1x128xf32> to vector<16x128xf32>
    %8 = arith.addf %5, %7 : vector<16x128xf32>
    %c0_8 = arith.constant 0 : index
    %c0_9 = arith.constant 0 : index
    %9 = vector.load %arg5[%c0_8, %c0_9] : memref<16x128xf32, #tpu.memory_space<vmem>>, vector<16x128xf32>
    tpu.vector_store %arg5[%c0_8, %c0_9], %8 {strides = array<i32>} : memref<16x128xf32, #tpu.memory_space<vmem>>, vector<16x128xf32>,
    %c16_i32 = arith.constant 16 : i32
    %10 = arith.muli %arg0, %c16_i32 : i32
    %11 = tpu.iota {dimensions = array<i32: 0>} : vector<16x1xi32>
    %12 = vector.broadcast %10 : i32 to vector<16x1xi32>
    %13 = arith.addi %12, %11 : vector<16x1xi32>
    %c16_i32_10 = arith.constant 16 : i32
    %14 = vector.broadcast %c16_i32_10 : i32 to vector<16x1xi32>
    %15 = arith.cmpi slt, %13, %14 : vector<16x1xi32>
    %16 = arith.extui %15 : vector<16x1xi1> to vector<16x1xi32>
    %17 = arith.sitofp %16 : vector<16x1xi32> to vector<16x1xf32>
    %18 = vector.broadcast %17 : vector<16x1xf32> to vector<16x128xf32>
    %19 = arith.mulf %8, %18 : vector<16x128xf32>
    %cst_11 = arith.constant dense<0.000000e+00> : vector<128xf32>
    %20 = vector.multi_reduction <add>, %19, %cst_11 [0] : vector<16x128xf32> to vector<128xf32>
    %21 = vector.shape_cast %20 : vector<128xf32> to vector<1x128xf32>
    %22 = arith.mulf %19, %19 : vector<16x128xf32>
    %cst_12 = arith.constant dense<0.000000e+00> : vector<128xf32>
    %23 = vector.multi_reduction <add>, %22, %cst_12 [0] : vector<16x128xf32> to vector<128xf32>
    %24 = vector.shape_cast %23 : vector<128xf32> to vector<1x128xf32>
    %25 = tpu.iota {dimensions = array<i32: 0>} : vector<8x128xi32>
    %26 = vector.shape_cast %21 : vector<1x128xf32> to vector<1x128xf32>
    %27 = vector.broadcast %26 : vector<1x128xf32> to vector<8x128xf32>
    %28 = vector.shape_cast %24 : vector<1x128xf32> to vector<1x128xf32>
    %29 = vector.broadcast %28 : vector<1x128xf32> to vector<8x128xf32>
    %c0_i32 = arith.constant 0 : i32
    %30 = vector.broadcast %c0_i32 : i32 to vector<8x128xi32>
    %31 = arith.cmpi eq, %25, %30 : vector<8x128xi32>
    %c1_i32 = arith.constant 1 : i32
    %32 = vector.broadcast %c1_i32 : i32 to vector<8x128xi32>
    %33 = arith.cmpi eq, %25, %32 : vector<8x128xi32>
    %cst_13 = arith.constant 0.000000e+00 : f32
    %34 = vector.broadcast %cst_13 : f32 to vector<8x128xf32>
    %35 = arith.select %33, %29, %34 : vector<8x128xi1>, vector<8x128xf32>
    %36 = arith.select %31, %27, %35 : vector<8x128xi1>, vector<8x128xf32>
    %37 = vector.shape_cast %36 : vector<8x128xf32> to vector<1x8x128xf32>
    %c0_14 = arith.constant 0 : index
    %c0_15 = arith.constant 0 : index
    %c0_16 = arith.constant 0 : index
    %38 = vector.load %arg6[%c0_14, %c0_15, %c0_16] : memref<1x8x128xf32, #tpu.memory_space<vmem>>, vector<1x8x128xf32>
    tpu.vector_store %arg6[%c0_14, %c0_15, %c0_16], %37 {strides = array<i32>} : memref<1x8x128xf32, #tpu.memory_space<vmem>>, vector<1x8x128xf32>,
    return
  }
  func.func @transform_0(%arg0: i32) -> (i32, i32) {
    %c0_i32 = arith.constant 0 : i32
    %c0_i32_0 = arith.constant 0 : i32
    return %arg0, %c0_i32 : i32, i32
  }
  func.func @transform_1(%arg0: i32) -> (i32, i32) {
    %c0_i32 = arith.constant 0 : i32
    %c0_i32_0 = arith.constant 0 : i32
    %c0_i32_1 = arith.constant 0 : i32
    return %c0_i32, %c0_i32_0 : i32, i32
  }
  func.func @transform_2(%arg0: i32) -> (i32, i32) {
    %c0_i32 = arith.constant 0 : i32
    %c0_i32_0 = arith.constant 0 : i32
    %c0_i32_1 = arith.constant 0 : i32
    return %c0_i32, %c0_i32_0 : i32, i32
  }
  func.func @transform_3(%arg0: i32) -> (i32, i32) {
    %c0_i32 = arith.constant 0 : i32
    %c0_i32_0 = arith.constant 0 : i32
    %c0_i32_1 = arith.constant 0 : i32
    return %c0_i32, %c0_i32_0 : i32, i32
  }
  func.func @transform_4(%arg0: i32) -> (i32, i32) {
    %c0_i32 = arith.constant 0 : i32
    %c0_i32_0 = arith.constant 0 : i32
    return %arg0, %c0_i32 : i32, i32
  }
  func.func @transform_5(%arg0: i32) -> (i32, i32, i32) {
    %c0_i32 = arith.constant 0 : i32
    %c0_i32_0 = arith.constant 0 : i32
    %c0_i32_1 = arith.constant 0 : i32
    return %arg0, %c0_i32, %c0_i32_0 : i32, i32, i32
  }
}

</mosaic_0001>

<bundles_post_ra>
// kernel: tpu_custom_call.1
= control target key start
LH: loop header
LB: loop body
LE: loop exit
PB: predicated region body
PF: predicated region fallthrough
CT: control target
= control target key end

     0   :  { %11 = vsyncpa [#allocation3], 0  ;;  %s505_s0 = inlined_call_operand.hbm [shape: bf16[16,16], index: 0, kind: input, shape index: {}]   ;;  %s506_s1 = inlined_call_operand.hbm [shape: bf16[16,128], index: 1, kind: input, shape index: {}]   ;;  %s507_s2 = inlined_call_operand.hbm [shape: bf16[128,128], index: 2, kind: input, shape index: {}]   ;;  %s508_s3 = inlined_call_operand.vmem [shape: f32[1,128], index: 3, kind: input, shape index: {}]   ;;  %s509_s4 = inlined_call_operand.hbm [shape: f32[16,128], index: 4, kind: output, shape index: {0}]   ;;  %s510_s5 = inlined_call_operand.hbm [shape: f32[1,8,128], index: 5, kind: output, shape index: {1}]  }
   0x1   :  { %12 = vsyncpa [#allocation6], 0 }
   0x2   :  { %13 = vsyncpa [#allocation4], 0 }
   0x3   :  { %14 = vsyncpa [#allocation10], 0  ;;  %s32_s20 = sshll.u32 %s506_s1, 4  ;;  %s448_s21 = smov [#allocation5]   ;;  %s33_s20 = int_to_ptr.hbm [resolvable:$true] %s32_s20 }
   0x4   :  { %s34_s22 = sshll.u32 %s448_s21, 4  ;;  %s19_s25 = sshll.u32 %s505_s0, 4  ;;  %s35_s22 = int_to_ptr.vmem [resolvable:$true] %s34_s22  ;;  %s20_s25 = int_to_ptr.hbm [resolvable:$true] %s19_s25 }
   0x5   :  { %s449_s26 = smov 64   ;;  %s450_s27 = smov 4  }
   0x6   :  { %40 = dma.hbm_to_vmem [thread:$0]  %s33_s20, 128, %s35_s22, [#allocation6], %s449_s26, %s449_s26, %s450_s27  }
   0x7   :  { %s451_s28 = smov [#allocation2]   ;;  %s45_s7 = sshll.u32 %s507_s2, 4  ;;  %s46_s7 = int_to_ptr.hbm [resolvable:$true] %s45_s7 }
   0x8   :  { %s21_s29 = sshll.u32 %s451_s28, 4  ;;  %s452_s1 = smov [#allocation7]   ;;  %s22_s29 = int_to_ptr.vmem [resolvable:$true] %s21_s29 }
   0x9   :  { %27 = dma.hbm_to_vmem [thread:$0]  %s20_s25, 128, %s22_s29, [#allocation3], %s449_s26, %s449_s26, %s450_s27  }
   0xa   :  { %s47_s8 = sshll.u32 %s452_s1, 4  ;;  %s48_s8 = int_to_ptr.vmem [resolvable:$true] %s47_s8 }
   0xb   :  { %53 = dma.hbm_to_vmem [thread:$0]  %s46_s7, 1024, %s48_s8, [#allocation6], %s449_s26, %s449_s26, %s450_s27  }
   0xc   :  { %440 = dma.done.wait [#allocation3], 128  }
   0xd   :  { %441 = vsyncadd [#allocation3], 4294967168 }
   0xe   :  { %442 = dma.done.wait [#allocation6], 1152  }
   0xf   :  { %443 = vsyncadd [#allocation6], 4294966144  ;;  %v301_v0 = vld [vmem:[#allocation5] sm:$0xff]  ;;  %v300_v2 = vld [vmem:[#allocation2] sm:$0xff]  ;;  %vm84_vm0 = vcmask 130048   ;;  %s453_s9 = smov [#allocation8]   ;;  %v188_v25 = vlaneseq }
  0x10   :  { %v309_v1 = vld [vmem:[#allocation7 + $0x38] sm:$0xff]  ;;  %95 = vmatpush.bf16.msra.mxu0 %v301_v0  ;;  %v308_v3 = vld [vmem:[#allocation7 + $0x30] sm:$0xff]  ;;  %v307_v4 = vld [vmem:[#allocation7 + $0x28] sm:$0xff]  ;;  %s227_s10 = sshll.u32 %s453_s9, 4  ;;  %s229_s13 = sshll.u32 %s509_s4, 4  ;;  %s228_s10 = int_to_ptr.vmem [resolvable:$true] %s227_s10  ;;  %s230_s13 = int_to_ptr.hbm [resolvable:$true] %s229_s13 }
  0x11   :  { %171 = vmatpush.bf16.msra.mxu1 %v309_v1  ;;  %v306_v5 = vld [vmem:[#allocation7 + $0x20] sm:$0xff]  ;;  %v305_v6 = vld [vmem:[#allocation7 + $0x18] sm:$0xff]  ;;  %v304_v7 = vld [vmem:[#allocation7 + $0x10] sm:$0xff]  ;;  %s454_s14 = smov 128   ;;  %s455_s15 = smov 8   ;;  %v189_v30 = vshrl.u32 %v188_v25, 7 }
  0x12   :  { %v303_v8 = vld [vmem:[#allocation7 + $0x8] sm:$0xff]  ;;  %v302_v9 = vld [vmem:[#allocation7] sm:$0xff]  ;;  %v319_v13 = vld [vmem:[%s508_s3] ss:$0 sm:$0xff]  ;;  %s456_s3 = smov [#allocation9]   ;;  %s243_s18 = sshll.u32 %s510_s5, 4  ;;  %s244_s18 = int_to_ptr.hbm [resolvable:$true] %s243_s18 }
  0x13   :  { %267 = vmatmul.msk.bf16.vlgmr.msra.gmra.mxu0 %vm84_vm0, %v300_v2  ;;  %vm219_vm1 = vcmp.eq.s32.totalorder %v189_v30, 1  ;;  %s241_s4 = sshll.u32 %s456_s3, 4  ;;  %vm218_vm2 = vcmp.eq.s32.totalorder %v189_v30, 0  ;;  %s242_s4 = int_to_ptr.vmem [resolvable:$true] %s241_s4 }
  0x15   :  { %172 = vmatpush.bf16.msra.mxu1 %v308_v3 }
  0x19   :  { %173 = vmatpush.bf16.msra.mxu1 %v307_v4 }
  0x1d   :  { %174 = vmatpush.bf16.msra.mxu1 %v306_v5 }
  0x21   :  { %175 = vmatpush.bf16.msra.mxu1 %v305_v6 }
  0x25   :  { %176 = vmatpush.bf16.msra.mxu1 %v304_v7 }
  0x29   :  { %177 = vmatpush.bf16.msra.mxu1 %v303_v8 }
  0x2d   :  { %178 = vmatpush.bf16.msra.mxu1 %v302_v9 }
  0x90   :  { %v97_v10 = vpop.f32.mrf.mxu0 }
  0x98   :  { %v99_v11 = vpop.f32.mrf.mxu0 }
  0x99   :  { %v102_v12 = vpack.c.bf16 %v99_v11, %v97_v10 }
  0x9b   :  { %179 = vmatmul.bf16.vlgmr.msra.gmra.mxu1 %v102_v12 }
 0x118   :  { %v180_v14 = vpop.f32.mrf.mxu1 }
 0x119   :  { %v181_v15 = vadd.f32 %v319_v13, %v180_v14 }
 0x11b   :  { %185 = vst [vmem:[#allocation8] sm:$0xff] %v181_v15  ;;  %v209_v18 = vmul.f32 %v181_v15, %v181_v15 }
 0x120   :  { %v182_v16 = vpop.f32.mrf.mxu1 }
 0x121   :  { %v183_v17 = vadd.f32 %v319_v13, %v182_v16 }
 0x123   :  { %186 = vst [vmem:[#allocation8 + $0x8] sm:$0xff] %v183_v17  ;;  %v202_v19 = vadd.f32 %v183_v17, %v181_v15  ;;  %v210_v20 = vmul.f32 %v183_v17, %v183_v17 }
 0x124   :  { %235 = dma.vmem_to_hbm [thread:$0]  %s228_s10, 256, %s230_s13, [#allocation4], %s454_s14, %s454_s14, %s455_s15  }
 0x125   :  { %v203_v21 = vrot.slane %v202_v19, 4  ;;  %v211_v22 = vadd.f32 %v210_v20, %v209_v18 }
 0x127   :  { %v204_v23 = vadd.f32 %v203_v21, %v202_v19  ;;  %v212_v24 = vrot.slane %v211_v22, 4 }
 0x129   :  { %v205_v26 = vrot.slane %v204_v23, 2  ;;  %v213_v27 = vadd.f32 %v212_v24, %v211_v22 }
 0x12b   :  { %v206_v28 = vadd.f32 %v205_v26, %v204_v23  ;;  %v214_v29 = vrot.slane %v213_v27, 2 }
 0x12d   :  { %v215_v31 = vadd.f32 %v214_v29, %v213_v27  ;;  %v207_v32 = vrot.slane %v206_v28, 1 }
 0x12f   :  { %v216_v33 = vrot.slane %v215_v31, 1  ;;  %v208_v35 = vadd.f32 %v207_v32, %v206_v28 }
 0x131   :  { %v217_v34 = vadd.f32 %v216_v33, %v215_v31 }
 0x133   :  { %v220_v36 = vsel %vm219_vm1, %v217_v34, 0.0 }
 0x134   :  { %v221_v37 = vsel %vm218_vm2, %v208_v35, %v220_v36 }
 0x135   :  { %222 = vst [vmem:[#allocation9] sm:$0xff] %v221_v37 }
 0x136   :  { %246 = dma.vmem_to_hbm [thread:$0]  %s242_s4, 128, %s244_s18, [#allocation10]  }
 0x137   :  { %444 = dma.done.wait [#allocation4], 256  }
 0x138   :  { %445 = vsyncadd [#allocation4], 4294967040 }
 0x139   :  { %446 = dma.done.wait [#allocation10], 128  }
 0x13a   :  { %447 = vsyncadd [#allocation10], 4294967168 }
 0x13b   :  { %255 = vsyncpa [#allocation3], 1 }
 0x13c   :  { %256 = vsyncpa [#allocation6], 1 }
 0x13d   :  { %257 = vsyncpa [#allocation4], 1 }
 0x13e   :  { %258 = vsyncpa [#allocation10], 1 }

</bundles_post_ra>
